<compile_context>
chip_gen: v7x
topology: tpu7x:2x2x1
jax: 0.10.0
libtpu: 0.0.40
codegen_flags: <defaults>
</compile_context>

<pallas_src>
import functools

import jax
import jax.numpy as jnp
from jax.experimental import pallas as pl
from jax.experimental.pallas import tpu as pltpu


def _round_up(x: int, m: int) -> int:
    return ((x + m - 1) // m) * m


def _quantile_loss_kernel(pred_ref, tgt_ref, q_ref, qm1_ref, out_ref, acc_ref,
                          *, n_rows: float):
    """One grid step over a (Q, tile_n) lane-dense slab.

    pred_ref : (Q, tile_n) predictions (cast to f32 in-kernel)
    tgt_ref  : (1, tile_n) targets
    q_ref    : (Q, 1) quantiles (f32)
    qm1_ref  : (Q, 1) quantiles - 1 (f32, hoisted to wrapper)
    out_ref  : (1, 1) SMEM scalar result
    acc_ref  : (Q, tile_n) f32 VMEM accumulator, resident across the grid
    """
    i = pl.program_id(0)

    @pl.when(i == 0)
    def _init():
        acc_ref[...] = jnp.zeros_like(acc_ref)

    pred = pred_ref[...].astype(jnp.float32)          # (Q, T)
    tgt = tgt_ref[...].astype(jnp.float32)            # (1, T), sublane-broadcast
    err = tgt - pred                                  # (Q, T)
    # pinball: q*e if e >= 0 else (q-1)*e  ==  max(q*e, (q-1)*e) for q in [0,1]
    acc_ref[...] += jnp.maximum(q_ref[...] * err, qm1_ref[...] * err)

    @pl.when(i == pl.num_programs(0) - 1)
    def _finalize():
        # Single cross-lane (XLU) reduction + divide, once per call.
        out_ref[0, 0] = jnp.sum(acc_ref[...]) * (1.0 / n_rows)


def quantile_loss(predictions: jnp.ndarray,
                  targets: jnp.ndarray,
                  quantiles,
                  *,
                  tile_n: int = 4096) -> jnp.ndarray:
    """predictions: [B, S, Q], targets: [B, S] -> scalar loss (float32)."""
    B, S, Q = predictions.shape
    n = B * S

    # Lane-dense layout: long axis on lanes, tiny quantile axis on sublanes.
    # (Inputs are streamed in their original dtype; cast happens per-tile.)
    pred = jnp.moveaxis(predictions, -1, 0).reshape(Q, n)   # (Q, N)
    tgt = targets.reshape(1, n)                              # (1, N)

    # Tile + zero-pad the lane axis; padded columns contribute 0 loss.
    t = min(tile_n, _round_up(n, 128))
    n_pad = _round_up(n, t)
    if n_pad != n:
        pred = jnp.pad(pred, ((0, 0), (0, n_pad - n)))
        tgt = jnp.pad(tgt, ((0, 0), (0, n_pad - n)))

    q = jnp.asarray(quantiles, dtype=jnp.float32).reshape(Q, 1)
    qm1 = q - 1.0                                            # hoisted (q - 1)

    grid = (n_pad // t,)
    kernel = functools.partial(_quantile_loss_kernel, n_rows=float(n))

    bytes_accessed = int(pred.size) * pred.dtype.itemsize \
        + int(tgt.size) * tgt.dtype.itemsize + 4

    out = pl.pallas_call(
        kernel,
        out_shape=jax.ShapeDtypeStruct((1, 1), jnp.float32),
        grid=grid,
        in_specs=[
            pl.BlockSpec((Q, t), lambda i: (0, i)),          # predictions
            pl.BlockSpec((1, t), lambda i: (0, i)),          # targets
            pl.BlockSpec((Q, 1), lambda i: (0, 0)),          # quantiles
            pl.BlockSpec((Q, 1), lambda i: (0, 0)),          # quantiles - 1
        ],
        out_specs=pl.BlockSpec(memory_space=pltpu.MemorySpace.SMEM),
        scratch_shapes=[pltpu.VMEM((Q, t), jnp.float32)],
        compiler_params=pltpu.CompilerParams(
            dimension_semantics=("arbitrary",),              # reduction axis
            vmem_limit_bytes=32 * 1024 * 1024,
        ),
        cost_estimate=pl.CostEstimate(
            flops=5 * Q * n, transcendentals=0, bytes_accessed=bytes_accessed),
    )(pred, tgt, q, qm1)
    return out[0, 0]


def quantile_loss_ref(predictions, targets, quantiles):
    """Pure-JAX reference mirroring the PyTorch forward exactly."""
    q = jnp.asarray(quantiles, dtype=jnp.float32)
    tgt = targets[..., None].astype(jnp.float32)
    err = tgt - predictions.astype(jnp.float32)
    loss = jnp.where(err >= 0.0, q * err, (q - 1.0) * err)
    return loss.sum(axis=-1).mean()


if __name__ == "__main__":
    # Module "parameters": the quantile list (from __init__).
    quantiles = [0.1, 0.5, 0.9]

    B, S, Q = 2, 8, len(quantiles)
    key = jax.random.PRNGKey(0)
    kp, kt = jax.random.split(key)
    predictions = jax.random.normal(kp, (B, S, Q), dtype=jnp.float32)
    targets = jax.random.normal(kt, (B, S), dtype=jnp.float32)

    loss = quantile_loss(predictions, targets, quantiles)
    loss = jax.block_until_ready(loss)

    ref = quantile_loss_ref(predictions, targets, quantiles)
    assert jnp.allclose(loss, ref, rtol=1e-5, atol=1e-6), (loss, ref)

    print("KERNEL_OK")
</pallas_src>

<mosaic_0001>
module attributes {stable_mosaic.version = 11 : i64} {
  func.func @_quantile_loss_kernel(%arg0: i32, %arg1: memref<3x128xf32, #tpu.memory_space<vmem>>, %arg2: memref<1x128xf32, #tpu.memory_space<vmem>>, %arg3: memref<3x1xf32, #tpu.memory_space<vmem>>, %arg4: memref<3x1xf32, #tpu.memory_space<vmem>>, %arg5: memref<1x1xf32, #tpu.memory_space<smem>>, %arg6: memref<3x128xf32, #tpu.memory_space<vmem>>) attributes {dimension_semantics = [#tpu.dimension_semantics<arbitrary>], iteration_bounds = array<i64: 1>, scalar_prefetch = 0 : i64, scratch_operands = 1 : i64, tpu.core_type = #tpu.core_type<tc>, window_params = [{transform_indices = @transform_0, window_bounds = array<i64: 3, 128>}, {transform_indices = @transform_1, window_bounds = array<i64: 1, 128>}, {pipeline_mode = #tpu.pipeline_mode<synchronous>, transform_indices = @transform_2, window_bounds = array<i64: 3, 1>}, {pipeline_mode = #tpu.pipeline_mode<synchronous>, transform_indices = @transform_3, window_bounds = array<i64: 3, 1>}, {transform_indices = @transform_4, window_bounds = array<i64: 1, 1>}]} {
    %c0_i32 = arith.constant 0 : i32
    %0 = arith.cmpi eq, %arg0, %c0_i32 : i32
    %1 = arith.extui %0 : i1 to i32
    %c0_i32_0 = arith.constant 0 : i32
    %2 = arith.cmpi ne, %1, %c0_i32_0 : i32
    scf.if %2 {
      %cst = arith.constant 0.000000e+00 : f32
      %20 = vector.broadcast %cst : f32 to vector<3x128xf32>
      %c0_14 = arith.constant 0 : index
      %c0_15 = arith.constant 0 : index
      %21 = vector.load %arg6[%c0_14, %c0_15] : memref<3x128xf32, #tpu.memory_space<vmem>>, vector<3x128xf32>
      tpu.vector_store %arg6[%c0_14, %c0_15], %20 {strides = array<i32>} : memref<3x128xf32, #tpu.memory_space<vmem>>, vector<3x128xf32>,
    } else {
    }
    %c0 = arith.constant 0 : index
    %c0_1 = arith.constant 0 : index
    %3 = vector.load %arg1[%c0, %c0_1] : memref<3x128xf32, #tpu.memory_space<vmem>>, vector<3x128xf32>
    %c0_2 = arith.constant 0 : index
    %c0_3 = arith.constant 0 : index
    %4 = vector.load %arg2[%c0_2, %c0_3] : memref<1x128xf32, #tpu.memory_space<vmem>>, vector<1x128xf32>
    %5 = vector.broadcast %4 : vector<1x128xf32> to vector<3x128xf32>
    %6 = arith.subf %5, %3 : vector<3x128xf32>
    %c0_4 = arith.constant 0 : index
    %c0_5 = arith.constant 0 : index
    %7 = vector.load %arg6[%c0_4, %c0_5] : memref<3x128xf32, #tpu.memory_space<vmem>>, vector<3x128xf32>
    %c0_6 = arith.constant 0 : index
    %c0_7 = arith.constant 0 : index
    %8 = vector.load %arg3[%c0_6, %c0_7] : memref<3x1xf32, #tpu.memory_space<vmem>>, vector<3x1xf32>
    %9 = vector.broadcast %8 : vector<3x1xf32> to vector<3x128xf32>
    %10 = arith.mulf %9, %6 : vector<3x128xf32>
    %c0_8 = arith.constant 0 : index
    %c0_9 = arith.constant 0 : index
    %11 = vector.load %arg4[%c0_8, %c0_9] : memref<3x1xf32, #tpu.memory_space<vmem>>, vector<3x1xf32>
    %12 = vector.broadcast %11 : vector<3x1xf32> to vector<3x128xf32>
    %13 = arith.mulf %12, %6 : vector<3x128xf32>
    %14 = arith.maximumf %10, %13 : vector<3x128xf32>
    %15 = arith.addf %7, %14 : vector<3x128xf32>
    %c0_10 = arith.constant 0 : index
    %c0_11 = arith.constant 0 : index
    %16 = vector.load %arg6[%c0_10, %c0_11] : memref<3x128xf32, #tpu.memory_space<vmem>>, vector<3x128xf32>
    tpu.vector_store %arg6[%c0_10, %c0_11], %15 {strides = array<i32>} : memref<3x128xf32, #tpu.memory_space<vmem>>, vector<3x128xf32>,
    %c0_i32_12 = arith.constant 0 : i32
    %17 = arith.cmpi eq, %arg0, %c0_i32_12 : i32
    %18 = arith.extui %17 : i1 to i32
    %c0_i32_13 = arith.constant 0 : i32
    %19 = arith.cmpi ne, %18, %c0_i32_13 : i32
    scf.if %19 {
      %c0_14 = arith.constant 0 : index
      %c0_15 = arith.constant 0 : index
      %20 = vector.load %arg6[%c0_14, %c0_15] : memref<3x128xf32, #tpu.memory_space<vmem>>, vector<3x128xf32>
      %21 = vector.shape_cast %20 : vector<3x128xf32> to vector<1x3x128xf32>
      %cst = arith.constant dense<0.000000e+00> : vector<1xf32>
      %22 = vector.multi_reduction <add>, %21, %cst [1, 2] : vector<1x3x128xf32> to vector<1xf32>
      %23 = vector.shape_cast %22 : vector<1xf32> to vector<1x1x1xf32>
      %24 = vector.extract %23[0, 0, 0] : f32 from vector<1x1x1xf32>
      %cst_16 = arith.constant 6.250000e-02 : f32
      %25 = arith.mulf %24, %cst_16 : f32
      %c0_17 = arith.constant 0 : index
      %c0_18 = arith.constant 0 : index
      %26 = memref.load %arg5[%c0_17, %c0_18] : memref<1x1xf32, #tpu.memory_space<smem>>
      memref.store %25, %arg5[%c0_17, %c0_18] : memref<1x1xf32, #tpu.memory_space<smem>>
    } else {
    }
    return
  }
  func.func @transform_0(%arg0: i32) -> (i32, i32) {
    %c0_i32 = arith.constant 0 : i32
    %c0_i32_0 = arith.constant 0 : i32
    return %c0_i32, %arg0 : i32, i32
  }
  func.func @transform_1(%arg0: i32) -> (i32, i32) {
    %c0_i32 = arith.constant 0 : i32
    %c0_i32_0 = arith.constant 0 : i32
    return %c0_i32, %arg0 : i32, i32
  }
  func.func @transform_2(%arg0: i32) -> (i32, i32) {
    %c0_i32 = arith.constant 0 : i32
    %c0_i32_0 = arith.constant 0 : i32
    %c0_i32_1 = arith.constant 0 : i32
    return %c0_i32, %c0_i32_0 : i32, i32
  }
  func.func @transform_3(%arg0: i32) -> (i32, i32) {
    %c0_i32 = arith.constant 0 : i32
    %c0_i32_0 = arith.constant 0 : i32
    %c0_i32_1 = arith.constant 0 : i32
    return %c0_i32, %c0_i32_0 : i32, i32
  }
  func.func @transform_4(%arg0: i32) -> (i32, i32) {
    %c0_i32 = arith.constant 0 : i32
    %c0_i32_0 = arith.constant 0 : i32
    %c0_i32_1 = arith.constant 0 : i32
    return %c0_i32, %c0_i32_0 : i32, i32
  }
}

</mosaic_0001>

<bundles_post_ra>
// kernel: tpu_custom_call.1
= control target key start
LH: loop header
LB: loop body
LE: loop exit
PB: predicated region body
PF: predicated region fallthrough
CT: control target
= control target key end

     0   :  { %v100_v1 = vmov 0   ;;  %v101_v2 = vmov 0.0   ;;  %s152_s0 = inlined_call_operand.vmem [shape: f32[3,128], index: 0, kind: input, shape index: {}]   ;;  %s153_s1 = inlined_call_operand.vmem [shape: f32[1,128], index: 1, kind: input, shape index: {}]   ;;  %s154_s2 = inlined_call_operand.vmem [shape: f32[3,1], index: 2, kind: input, shape index: {}]   ;;  %s155_s3 = inlined_call_operand.vmem [shape: f32[3,1], index: 3, kind: input, shape index: {}]   ;;  %s156_s4 = inlined_call_operand.hbm [shape: f32[1,1], index: 4, kind: output, shape index: {}]  }
   0x1   :  { %v33_v0 = vld [vmem:[%s154_s2] sm:$0x7]  ;;  %87 = vset.pattern.permute.xlu0 %v100_v1  ;;  %22 = vst [vmem:[#allocation2] sm:$0x7] %v101_v2 }
   0x2   :  { %36 = vperm.xlu0 %87, %v33_v0  }
   0x3   :  { %9 = vsyncpa [#allocation4], 0  ;;  %v40_v3 = vld [vmem:[%s155_s3] sm:$0x7]  ;;  %vm54_vm0 = vcmask 1042432   ;;  %s88_s23 = scalar_lea.hbm %s156_s4, 16 }
   0x4   :  { %v23_v4 = vld [vmem:[%s152_s0] sm:$0x7]  ;;  %p89_p0 = scmp.ne.s32.totalorder %s156_s4, %s88_s23  ;;  %p92_p1 = scmp.lt.u32.totalorder %s88_s23, %s156_s4 }
   0x5   :  { %v81_v5 = vld [vmem:[%s153_s1] ss:$0 sm:$0xff] }
   0x6   :  { %43 = vperm.xlu0 %87, %v40_v3   ;;  %v31_v7 = vsub.f32 %v81_v5, %v23_v4  ;;  %p94_p2 = pnand %p92_p1, %p89_p0 }
   0x8   :  { %v32_v11 = vld [vmem:[#allocation2] sm:$0x7] }
  0x81   :  { %v37_v6 = vpop.permute.xlu0 %36 }
  0x82   :  { %v39_v9 = vmul.f32 %v37_v6, %v31_v7 }
  0x85   :  { %v44_v8 = vpop.permute.xlu0 %43 }
  0x86   :  { %v46_v10 = vmul.f32 %v44_v8, %v31_v7 }
  0x88   :  { %v47_v12 = vmax.f32 %v39_v9, %v46_v10 }
  0x8a   :  { %v48_v13 = vadd.f32 %v47_v12, %v32_v11 }
  0x8c   :  { %49 = vst [vmem:[#allocation2] sm:$0x7] %v48_v13 }
  0x93   :  { %v53_v14 = vld [vmem:[#allocation2] sm:$0x7] }
  0x94   :  { %v55_v15 = vsel %vm54_vm0, %v53_v14, 0.0 }
  0x95   :  { %56 = vadd.xlane.f32.xlu1 %v55_v15 }
 0x122   :  { %v57_v16 = vpop.xlane.xlu1 %56 }
 0x123   :  { %v58_v17 = vrot.slane %v57_v16, 4 }
 0x125   :  { %v59_v18 = vadd.f32 %v58_v17, %v57_v16 }
 0x127   :  { %v60_v19 = vrot.slane %v59_v18, 2 }
 0x129   :  { %v61_v20 = vadd.f32 %v60_v19, %v59_v18 }
 0x12b   :  { %v62_v21 = vrot.slane %v61_v20, 1 }
 0x12d   :  { %v63_v22 = vadd.f32 %v62_v21, %v61_v20 }
 0x12f   :  { %82 = vpush %v63_v22 }
 0x160   :  { %s83_s0 = spop %82 }
 0x161   :  { %s65_s1 = smul.f32 0.0625, %s83_s0 }
 0x163   :  { %67 = sst [smem:[#allocation3]] %s65_s1 }
 0x164   :  { %97 = shalt.err (!%p94_p2)
}
 0x165   :  { %s102_s28 = smov [#allocation3]  }
 0x166   :  { %75 = dma.smem_to_hbm %s102_s28, 16, %s156_s4, [#allocation4]  }
 0x167   :  { %98 = dma.done.wait [#allocation4], 16  }
 0x168   :  { %99 = vsyncadd [#allocation4], 4294967280 }
 0x169   :  { %79 = sfence }
 0x16a   :  { %80 = vsyncpa [#allocation4], 1 }

</bundles_post_ra>
